<compile_context>
chip_gen: v5e
topology: v5e:2x2
jax: 0.10.0
libtpu: 0.0.40
codegen_flags: <defaults>
</compile_context>

<pallas_src>
import jax
import jax.numpy as jnp
from jax.experimental import pallas as pl
from jax.experimental.pallas import tpu as pltpu

NEG_SLOPE = 0.01  # F.leaky_relu default
LANE = 128


def _round_up(a, m):
    return ((a + m - 1) // m) * m


def make_mlp_kernel(layer_cfg):
    """layer_cfg: tuple of (k_padded, col_offset, n_padded, activate) per layer."""

    def kernel(x_ref, w_ref, b_ref, o_ref):
        h = x_ref[...]  # (TM, in_p) f32
        for k, off, n, act in layer_cfg:
            w = w_ref[:k, off:off + n]          # static, 128-aligned slice
            b = b_ref[:, off:off + n]           # (1, n) broadcasts over rows
            y = jnp.dot(h, w, preferred_element_type=jnp.float32) + b
            h = jnp.where(y > 0, y, NEG_SLOPE * y) if act else y
        o_ref[...] = h.astype(o_ref.dtype)      # lane-dense (TM, out_p) store

    return kernel


def pack_params(params, input_size, hidden_size, output_size):
    """Pack 6 (in,out) weights + 6 biases into one padded slab each.

    Returns (w_slab, b_slab, layer_cfg, (in_p, h_p, out_p)).
    All padding is zero, so padded lanes carry exact zeros through every
    layer (leaky_relu(0) == 0) and the true outputs are unaffected.
    """
    in_p = _round_up(input_size, LANE)
    h_p = _round_up(hidden_size, LANE)
    out_p = _round_up(output_size, LANE)
    k_max = max(in_p, h_p)

    layer_defs = [
        ("w1", "b1", input_size, in_p, hidden_size, h_p, True),
        ("w2", "b2", hidden_size, h_p, hidden_size, h_p, True),
        ("w3", "b3", hidden_size, h_p, hidden_size, h_p, True),
        ("w4", "b4", hidden_size, h_p, hidden_size, h_p, True),
        ("w5", "b5", hidden_size, h_p, hidden_size, h_p, True),
        ("w8", "b8", hidden_size, h_p, output_size, out_p, False),
    ]
    n_total = sum(d[5] for d in layer_defs)

    w_slab = jnp.zeros((k_max, n_total), jnp.float32)
    b_slab = jnp.zeros((1, n_total), jnp.float32)
    layer_cfg = []
    off = 0
    for wname, bname, k_a, k_p, n_a, n_p, act in layer_defs:
        w_slab = w_slab.at[:k_a, off:off + n_a].set(params[wname])
        b_slab = b_slab.at[:, off:off + n_a].set(params[bname])
        layer_cfg.append((k_p, off, n_p, act))
        off += n_p

    return w_slab, b_slab, tuple(layer_cfg), (in_p, h_p, out_p)


def net_forward(x, params, input_size, hidden_size, output_size):
    """x: (B, input_size) f32. params: dict of (W, b), W stored (in, out)."""
    B = x.shape[0]

    w_slab, b_slab, layer_cfg, (in_p, h_p, out_p) = pack_params(
        params, input_size, hidden_size, output_size)

    # Batch tiling: big enough tiles to feed the MXU, padded batch so the
    # grid divides evenly.
    TM = min(512, _round_up(B, 8))
    B_pad = _round_up(B, TM)
    grid = (B_pad // TM,)

    # Pad activations to the lane-dense input width; padded columns are zero.
    x_pad = jnp.zeros((B_pad, in_p), jnp.float32).at[:B, :input_size].set(x)

    # Rough VMEM budget with headroom; keep under v7x's 64 MiB ceiling and
    # above v5e's 16 MiB default scoped limit.
    est_bytes = 4 * (
        w_slab.size + 8 * b_slab.shape[1]
        + 2 * TM * in_p + 2 * TM * out_p
        + 6 * TM * max(in_p, h_p, out_p))
    vmem_limit = int(min(64 * 1024 * 1024, max(4 * est_bytes, 16 * 1024 * 1024)))

    out_full = pl.pallas_call(
        make_mlp_kernel(layer_cfg),
        out_shape=jax.ShapeDtypeStruct((B_pad, out_p), jnp.float32),
        grid_spec=pltpu.PrefetchScalarGridSpec(
            num_scalar_prefetch=0,
            grid=grid,
            in_specs=[
                pl.BlockSpec((TM, in_p), lambda i: (i, 0)),       # activations
                pl.BlockSpec(w_slab.shape, lambda i: (0, 0)),     # resident weights
                pl.BlockSpec(b_slab.shape, lambda i: (0, 0)),     # resident biases
            ],
            out_specs=pl.BlockSpec((TM, out_p), lambda i: (i, 0)),
        ),
        compiler_params=pltpu.CompilerParams(
            dimension_semantics=("parallel",),
            vmem_limit_bytes=vmem_limit,
        ),
    )(x_pad, w_slab, b_slab)

    return out_full[:B, :output_size]


def init_params(key, input_size, hidden_size, output_size):
    """Deterministic synthetic parameters matching nn.Linear init shapes.

    Weights are generated in PyTorch's (out, in) convention, then transposed
    to (in, out) for the kernel's row-major matmul.
    """
    sizes = [
        ("w1", "b1", input_size, hidden_size),
        ("w2", "b2", hidden_size, hidden_size),
        ("w3", "b3", hidden_size, hidden_size),
        ("w4", "b4", hidden_size, hidden_size),
        ("w5", "b5", hidden_size, hidden_size),
        ("w8", "b8", hidden_size, output_size),
    ]
    params = {}
    for wname, bname, fan_in, fan_out in sizes:
        key, kw, kb = jax.random.split(key, 3)
        bound = 1.0 / jnp.sqrt(fan_in)
        w_torch = jax.random.uniform(kw, (fan_out, fan_in), jnp.float32,
                                     minval=-bound, maxval=bound)
        b = jax.random.uniform(kb, (fan_out,), jnp.float32,
                               minval=-bound, maxval=bound)
        params[wname] = jnp.transpose(w_torch)      # (in, out)
        params[bname] = b.reshape(1, fan_out)       # (1, out)
    return params


def reference_forward(x, params):
    """Pure-JAX reference for correctness checking."""
    h = x
    for name in ["1", "2", "3", "4", "5"]:
        h = h @ params["w" + name] + params["b" + name]
        h = jnp.where(h > 0, h, NEG_SLOPE * h)
    return h @ params["w8"] + params["b8"]


if __name__ == "__main__":
    input_size, hidden_size, output_size = 16, 32, 8
    batch = 8

    key = jax.random.PRNGKey(0)
    key, kx = jax.random.split(key)
    x = jax.random.normal(kx, (batch, input_size), jnp.float32)

    params = init_params(key, input_size, hidden_size, output_size)

    out = net_forward(x, params, input_size, hidden_size, output_size)
    out = jax.block_until_ready(out)

    ref = reference_forward(x, params)
    assert out.shape == (batch, output_size), out.shape
    assert jnp.allclose(out, ref, atol=1e-5, rtol=1e-5), \
        f"max abs err = {jnp.max(jnp.abs(out - ref))}"

    print("KERNEL_OK")
</pallas_src>

<mosaic_0001>
module attributes {stable_mosaic.version = 11 : i64} {
  func.func @kernel(%arg0: i32, %arg1: memref<8x128xf32, #tpu.memory_space<vmem>>, %arg2: memref<128x768xf32, #tpu.memory_space<vmem>>, %arg3: memref<1x768xf32, #tpu.memory_space<vmem>>, %arg4: memref<8x128xf32, #tpu.memory_space<vmem>>) attributes {dimension_semantics = [#tpu.dimension_semantics<parallel>], iteration_bounds = array<i64: 1>, scalar_prefetch = 0 : i64, scratch_operands = 0 : i64, tpu.core_type = #tpu.core_type<tc>, window_params = [{transform_indices = @transform_0, window_bounds = array<i64: 8, 128>}, {pipeline_mode = #tpu.pipeline_mode<synchronous>, transform_indices = @transform_1, window_bounds = array<i64: 128, 768>}, {pipeline_mode = #tpu.pipeline_mode<synchronous>, transform_indices = @transform_2, window_bounds = array<i64: 1, 768>}, {transform_indices = @transform_3, window_bounds = array<i64: 8, 128>}]} {
    %c0 = arith.constant 0 : index
    %c0_0 = arith.constant 0 : index
    %0 = vector.load %arg1[%c0, %c0_0] : memref<8x128xf32, #tpu.memory_space<vmem>>, vector<8x128xf32>
    %c0_1 = arith.constant 0 : index
    %c0_2 = arith.constant 0 : index
    %1 = vector.load %arg2[%c0_1, %c0_2] : memref<128x768xf32, #tpu.memory_space<vmem>>, vector<128x128xf32>
    %c0_3 = arith.constant 0 : index
    %c0_4 = arith.constant 0 : index
    %2 = vector.load %arg3[%c0_3, %c0_4] : memref<1x768xf32, #tpu.memory_space<vmem>>, vector<1x128xf32>
    %cst = arith.constant dense<0.000000e+00> : vector<8x128xf32>
    %3 = tpu.matmul %0, %1, %cst {dimension_numbers = #tpu.dot_dimension_numbers<[1], [0], [0], [1], [0, 0, 1, 1], [], []>} : vector<8x128xf32>, vector<128x128xf32>, vector<8x128xf32> -> vector<8x128xf32>
    %4 = vector.broadcast %2 : vector<1x128xf32> to vector<8x128xf32>
    %5 = arith.addf %3, %4 : vector<8x128xf32>
    %cst_5 = arith.constant 0.000000e+00 : f32
    %6 = vector.broadcast %cst_5 : f32 to vector<8x128xf32>
    %7 = arith.cmpf ogt, %5, %6 : vector<8x128xf32>
    %cst_6 = arith.constant 0.00999999977 : f32
    %8 = vector.broadcast %cst_6 : f32 to vector<8x128xf32>
    %9 = arith.mulf %8, %5 : vector<8x128xf32>
    %10 = arith.select %7, %5, %9 : vector<8x128xi1>, vector<8x128xf32>
    %c0_7 = arith.constant 0 : index
    %c128 = arith.constant 128 : index
    %11 = vector.load %arg2[%c0_7, %c128] : memref<128x768xf32, #tpu.memory_space<vmem>>, vector<128x128xf32>
    %c0_8 = arith.constant 0 : index
    %c128_9 = arith.constant 128 : index
    %12 = vector.load %arg3[%c0_8, %c128_9] : memref<1x768xf32, #tpu.memory_space<vmem>>, vector<1x128xf32>
    %cst_10 = arith.constant dense<0.000000e+00> : vector<8x128xf32>
    %13 = tpu.matmul %10, %11, %cst_10 {dimension_numbers = #tpu.dot_dimension_numbers<[1], [0], [0], [1], [0, 0, 1, 1], [], []>} : vector<8x128xf32>, vector<128x128xf32>, vector<8x128xf32> -> vector<8x128xf32>
    %14 = vector.broadcast %12 : vector<1x128xf32> to vector<8x128xf32>
    %15 = arith.addf %13, %14 : vector<8x128xf32>
    %cst_11 = arith.constant 0.000000e+00 : f32
    %16 = vector.broadcast %cst_11 : f32 to vector<8x128xf32>
    %17 = arith.cmpf ogt, %15, %16 : vector<8x128xf32>
    %cst_12 = arith.constant 0.00999999977 : f32
    %18 = vector.broadcast %cst_12 : f32 to vector<8x128xf32>
    %19 = arith.mulf %18, %15 : vector<8x128xf32>
    %20 = arith.select %17, %15, %19 : vector<8x128xi1>, vector<8x128xf32>
    %c0_13 = arith.constant 0 : index
    %c256 = arith.constant 256 : index
    %21 = vector.load %arg2[%c0_13, %c256] : memref<128x768xf32, #tpu.memory_space<vmem>>, vector<128x128xf32>
    %c0_14 = arith.constant 0 : index
    %c256_15 = arith.constant 256 : index
    %22 = vector.load %arg3[%c0_14, %c256_15] : memref<1x768xf32, #tpu.memory_space<vmem>>, vector<1x128xf32>
    %cst_16 = arith.constant dense<0.000000e+00> : vector<8x128xf32>
    %23 = tpu.matmul %20, %21, %cst_16 {dimension_numbers = #tpu.dot_dimension_numbers<[1], [0], [0], [1], [0, 0, 1, 1], [], []>} : vector<8x128xf32>, vector<128x128xf32>, vector<8x128xf32> -> vector<8x128xf32>
    %24 = vector.broadcast %22 : vector<1x128xf32> to vector<8x128xf32>
    %25 = arith.addf %23, %24 : vector<8x128xf32>
    %cst_17 = arith.constant 0.000000e+00 : f32
    %26 = vector.broadcast %cst_17 : f32 to vector<8x128xf32>
    %27 = arith.cmpf ogt, %25, %26 : vector<8x128xf32>
    %cst_18 = arith.constant 0.00999999977 : f32
    %28 = vector.broadcast %cst_18 : f32 to vector<8x128xf32>
    %29 = arith.mulf %28, %25 : vector<8x128xf32>
    %30 = arith.select %27, %25, %29 : vector<8x128xi1>, vector<8x128xf32>
    %c0_19 = arith.constant 0 : index
    %c384 = arith.constant 384 : index
    %31 = vector.load %arg2[%c0_19, %c384] : memref<128x768xf32, #tpu.memory_space<vmem>>, vector<128x128xf32>
    %c0_20 = arith.constant 0 : index
    %c384_21 = arith.constant 384 : index
    %32 = vector.load %arg3[%c0_20, %c384_21] : memref<1x768xf32, #tpu.memory_space<vmem>>, vector<1x128xf32>
    %cst_22 = arith.constant dense<0.000000e+00> : vector<8x128xf32>
    %33 = tpu.matmul %30, %31, %cst_22 {dimension_numbers = #tpu.dot_dimension_numbers<[1], [0], [0], [1], [0, 0, 1, 1], [], []>} : vector<8x128xf32>, vector<128x128xf32>, vector<8x128xf32> -> vector<8x128xf32>
    %34 = vector.broadcast %32 : vector<1x128xf32> to vector<8x128xf32>
    %35 = arith.addf %33, %34 : vector<8x128xf32>
    %cst_23 = arith.constant 0.000000e+00 : f32
    %36 = vector.broadcast %cst_23 : f32 to vector<8x128xf32>
    %37 = arith.cmpf ogt, %35, %36 : vector<8x128xf32>
    %cst_24 = arith.constant 0.00999999977 : f32
    %38 = vector.broadcast %cst_24 : f32 to vector<8x128xf32>
    %39 = arith.mulf %38, %35 : vector<8x128xf32>
    %40 = arith.select %37, %35, %39 : vector<8x128xi1>, vector<8x128xf32>
    %c0_25 = arith.constant 0 : index
    %c512 = arith.constant 512 : index
    %41 = vector.load %arg2[%c0_25, %c512] : memref<128x768xf32, #tpu.memory_space<vmem>>, vector<128x128xf32>
    %c0_26 = arith.constant 0 : index
    %c512_27 = arith.constant 512 : index
    %42 = vector.load %arg3[%c0_26, %c512_27] : memref<1x768xf32, #tpu.memory_space<vmem>>, vector<1x128xf32>
    %cst_28 = arith.constant dense<0.000000e+00> : vector<8x128xf32>
    %43 = tpu.matmul %40, %41, %cst_28 {dimension_numbers = #tpu.dot_dimension_numbers<[1], [0], [0], [1], [0, 0, 1, 1], [], []>} : vector<8x128xf32>, vector<128x128xf32>, vector<8x128xf32> -> vector<8x128xf32>
    %44 = vector.broadcast %42 : vector<1x128xf32> to vector<8x128xf32>
    %45 = arith.addf %43, %44 : vector<8x128xf32>
    %cst_29 = arith.constant 0.000000e+00 : f32
    %46 = vector.broadcast %cst_29 : f32 to vector<8x128xf32>
    %47 = arith.cmpf ogt, %45, %46 : vector<8x128xf32>
    %cst_30 = arith.constant 0.00999999977 : f32
    %48 = vector.broadcast %cst_30 : f32 to vector<8x128xf32>
    %49 = arith.mulf %48, %45 : vector<8x128xf32>
    %50 = arith.select %47, %45, %49 : vector<8x128xi1>, vector<8x128xf32>
    %c0_31 = arith.constant 0 : index
    %c640 = arith.constant 640 : index
    %51 = vector.load %arg2[%c0_31, %c640] : memref<128x768xf32, #tpu.memory_space<vmem>>, vector<128x128xf32>
    %c0_32 = arith.constant 0 : index
    %c640_33 = arith.constant 640 : index
    %52 = vector.load %arg3[%c0_32, %c640_33] : memref<1x768xf32, #tpu.memory_space<vmem>>, vector<1x128xf32>
    %cst_34 = arith.constant dense<0.000000e+00> : vector<8x128xf32>
    %53 = tpu.matmul %50, %51, %cst_34 {dimension_numbers = #tpu.dot_dimension_numbers<[1], [0], [0], [1], [0, 0, 1, 1], [], []>} : vector<8x128xf32>, vector<128x128xf32>, vector<8x128xf32> -> vector<8x128xf32>
    %54 = vector.broadcast %52 : vector<1x128xf32> to vector<8x128xf32>
    %55 = arith.addf %53, %54 : vector<8x128xf32>
    %c0_35 = arith.constant 0 : index
    %c0_36 = arith.constant 0 : index
    %56 = vector.load %arg4[%c0_35, %c0_36] : memref<8x128xf32, #tpu.memory_space<vmem>>, vector<8x128xf32>
    tpu.vector_store %arg4[%c0_35, %c0_36], %55 {strides = array<i32>} : memref<8x128xf32, #tpu.memory_space<vmem>>, vector<8x128xf32>,
    return
  }
  func.func @transform_0(%arg0: i32) -> (i32, i32) {
    %c0_i32 = arith.constant 0 : i32
    %c0_i32_0 = arith.constant 0 : i32
    return %arg0, %c0_i32 : i32, i32
  }
  func.func @transform_1(%arg0: i32) -> (i32, i32) {
    %c0_i32 = arith.constant 0 : i32
    %c0_i32_0 = arith.constant 0 : i32
    %c0_i32_1 = arith.constant 0 : i32
    return %c0_i32, %c0_i32_0 : i32, i32
  }
  func.func @transform_2(%arg0: i32) -> (i32, i32) {
    %c0_i32 = arith.constant 0 : i32
    %c0_i32_0 = arith.constant 0 : i32
    %c0_i32_1 = arith.constant 0 : i32
    return %c0_i32, %c0_i32_0 : i32, i32
  }
  func.func @transform_3(%arg0: i32) -> (i32, i32) {
    %c0_i32 = arith.constant 0 : i32
    %c0_i32_0 = arith.constant 0 : i32
    return %arg0, %c0_i32 : i32, i32
  }
}

</mosaic_0001>

<bundles_post_ra>
// kernel: tpu_custom_call.1
= control target key start
LH: loop header
LB: loop body
LE: loop exit
PB: predicated region body
PF: predicated region fallthrough
CT: control target
= control target key end

     0   :  { %8 = vsyncpa [#allocation3], 0  ;;  %s485_s0 = inlined_call_operand.hbm [shape: f32[8,128], index: 0, kind: input, shape index: {}]   ;;  %s486_s1 = inlined_call_operand.hbm [shape: f32[128,768], index: 1, kind: input, shape index: {}]   ;;  %s487_s2 = inlined_call_operand.hbm [shape: f32[1,768], index: 2, kind: input, shape index: {}]   ;;  %s488_s3 = inlined_call_operand.hbm [shape: f32[8,128], index: 3, kind: output, shape index: {}]  }
   0x1   :  { %9 = vsyncpa [#allocation6], 0  ;;  %s26_s14 = sshll.u32 %s486_s1, 4  ;;  %s27_s14 = int_to_ptr.hbm [resolvable:$true] %s26_s14 }
   0x2   :  { %10 = vsyncpa [#allocation4], 0  ;;  %s447_s15 = smov [#allocation5]   ;;  %s16_s19 = sshll.u32 %s485_s0, 4  ;;  %s17_s19 = int_to_ptr.hbm [resolvable:$true] %s16_s19 }
   0x3   :  { %s28_s16 = sshll.u32 %s447_s15, 4  ;;  %s448_s20 = smov 768   ;;  %s29_s16 = int_to_ptr.vmem [resolvable:$true] %s28_s16 }
   0x4   :  { %s449_s21 = smov 48   ;;  %s450_s22 = smov [#allocation2]  }
   0x5   :  { %34 = dma.hbm_to_vmem [thread:$0]  %s27_s14, 12288, %s29_s16, [#allocation6], %s448_s20, %s448_s20, %s449_s21  }
   0x6   :  { %s18_s23 = sshll.u32 %s450_s22, 4  ;;  %s40_s26 = sshll.u32 %s487_s2, 4  ;;  %s19_s23 = int_to_ptr.vmem [resolvable:$true] %s18_s23  ;;  %s41_s26 = int_to_ptr.hbm [resolvable:$true] %s40_s26 }
   0x7   :  { %21 = dma.hbm_to_vmem [thread:$0]  %s17_s19, 128, %s19_s23, [#allocation3]  }
   0x8   :  { %s451_s1 = smov [#allocation7]  }
   0x9   :  { %s42_s27 = sshll.u32 %s451_s1, 4  ;;  %s43_s27 = int_to_ptr.vmem [resolvable:$true] %s42_s27 }
   0xa   :  { %45 = dma.hbm_to_vmem [thread:$0]  %s41_s26, 96, %s43_s27, [#allocation6]  }
   0xb   :  { %441 = dma.done.wait [#allocation3], 128  }
   0xc   :  { %442 = vsyncadd [#allocation3], 4294967168 }
   0xd   :  { %443 = dma.done.wait [#allocation6], 12384  }
   0xe   :  { %444 = vsyncadd [#allocation6], 4294954912  ;;  %v74_v0 = vld [vmem:[#allocation5 + $0x2d0] sm:$0xff]  ;;  %v73_v1 = vld [vmem:[#allocation5 + $0x2a0] sm:$0xff]  ;;  %s452_s0 = smov [#allocation8]   ;;  %s322_s30 = sshll.u32 %s488_s3, 4  ;;  %s323_s30 = int_to_ptr.hbm [resolvable:$true] %s322_s30 }
   0xf   :  { %79 = vmatpush.msra.mxu0 %v74_v0  ;;  %v72_v2 = vld [vmem:[#allocation5 + $0x270] sm:$0xff]  ;;  %v71_v3 = vld [vmem:[#allocation5 + $0x240] sm:$0xff]  ;;  %v117_v4 = vld [vmem:[#allocation5 + $0x2d8] sm:$0xff]  ;;  %s320_s2 = sshll.u32 %s452_s0, 4  ;;  %s321_s2 = int_to_ptr.vmem [resolvable:$true] %s320_s2 }
  0x10   :  { %v70_v5 = vld [vmem:[#allocation5 + $0x210] sm:$0xff]  ;;  %122 = vmatpush.msra.mxu1 %v117_v4  ;;  %v116_v6 = vld [vmem:[#allocation5 + $0x2a8] sm:$0xff]  ;;  %v115_v7 = vld [vmem:[#allocation5 + $0x278] sm:$0xff] }
  0x11   :  { %80 = vmatpush.msra.mxu0 %v73_v1  ;;  %v69_v8 = vld [vmem:[#allocation5 + $0x1e0] sm:$0xff]  ;;  %v68_v9 = vld [vmem:[#allocation5 + $0x1b0] sm:$0xff]  ;;  %v114_v10 = vld [vmem:[#allocation5 + $0x248] sm:$0xff] }
  0x12   :  { %123 = vmatpush.msra.mxu1 %v116_v6  ;;  %v113_v11 = vld [vmem:[#allocation5 + $0x218] sm:$0xff]  ;;  %v67_v12 = vld [vmem:[#allocation5 + $0x180] sm:$0xff]  ;;  %v112_v13 = vld [vmem:[#allocation5 + $0x1e8] sm:$0xff] }
  0x13   :  { %81 = vmatpush.msra.mxu0 %v72_v2  ;;  %v66_v14 = vld [vmem:[#allocation5 + $0x150] sm:$0xff]  ;;  %v111_v15 = vld [vmem:[#allocation5 + $0x1b8] sm:$0xff]  ;;  %v65_v16 = vld [vmem:[#allocation5 + $0x120] sm:$0xff] }
  0x14   :  { %124 = vmatpush.msra.mxu1 %v115_v7  ;;  %v110_v17 = vld [vmem:[#allocation5 + $0x188] sm:$0xff]  ;;  %v64_v18 = vld [vmem:[#allocation5 + $0xf0] sm:$0xff]  ;;  %v109_v19 = vld [vmem:[#allocation5 + $0x158] sm:$0xff] }
  0x15   :  { %82 = vmatpush.msra.mxu0 %v71_v3  ;;  %v63_v20 = vld [vmem:[#allocation5 + $0xc0] sm:$0xff]  ;;  %v108_v21 = vld [vmem:[#allocation5 + $0x128] sm:$0xff]  ;;  %v62_v22 = vld [vmem:[#allocation5 + $0x90] sm:$0xff] }
  0x16   :  { %125 = vmatpush.msra.mxu1 %v114_v10  ;;  %v107_v23 = vld [vmem:[#allocation5 + $0xf8] sm:$0xff]  ;;  %v61_v24 = vld [vmem:[#allocation5 + $0x60] sm:$0xff]  ;;  %v106_v25 = vld [vmem:[#allocation5 + $0xc8] sm:$0xff] }
  0x17   :  { %83 = vmatpush.msra.mxu0 %v70_v5  ;;  %v60_v26 = vld [vmem:[#allocation5 + $0x30] sm:$0xff]  ;;  %v105_v27 = vld [vmem:[#allocation5 + $0x98] sm:$0xff]  ;;  %v59_v28 = vld [vmem:[#allocation5] sm:$0xff] }
  0x18   :  { %126 = vmatpush.msra.mxu1 %v113_v11  ;;  %v58_v29 = vld [vmem:[#allocation2] sm:$0xff]  ;;  %v104_v30 = vld [vmem:[#allocation5 + $0x68] sm:$0xff]  ;;  %v160_v33 = vld [vmem:[#allocation5 + $0x2e0] sm:$0xff] }
  0x19   :  { %84 = vmatpush.msra.mxu0 %v69_v8  ;;  %v103_v31 = vld [vmem:[#allocation5 + $0x38] sm:$0xff]  ;;  %v102_v32 = vld [vmem:[#allocation5 + $0x8] sm:$0xff]  ;;  %v159_v34 = vld [vmem:[#allocation5 + $0x2b0] sm:$0xff]  ;;  %165 = vmatpush.msra.mxu2 %v160_v33 }
  0x1a   :  { %127 = vmatpush.msra.mxu1 %v112_v13  ;;  %v158_v35 = vld [vmem:[#allocation5 + $0x280] sm:$0xff]  ;;  %v157_v36 = vld [vmem:[#allocation5 + $0x250] sm:$0xff]  ;;  %v203_v54 = vld [vmem:[#allocation5 + $0x2e8] sm:$0xff] }
  0x1b   :  { %85 = vmatpush.msra.mxu0 %v68_v9  ;;  %166 = vmatpush.msra.mxu2 %v159_v34  ;;  %v156_v37 = vld [vmem:[#allocation5 + $0x220] sm:$0xff]  ;;  %v155_v38 = vld [vmem:[#allocation5 + $0x1f0] sm:$0xff]  ;;  %v202_v55 = vld [vmem:[#allocation5 + $0x2b8] sm:$0xff] }
  0x1c   :  { %128 = vmatpush.msra.mxu1 %v111_v15  ;;  %v154_v39 = vld [vmem:[#allocation5 + $0x1c0] sm:$0xff]  ;;  %v153_v40 = vld [vmem:[#allocation5 + $0x190] sm:$0xff]  ;;  %208 = vmatpush.msra.mxu3 %v203_v54  ;;  %v201_v56 = vld [vmem:[#allocation5 + $0x288] sm:$0xff] }
  0x1d   :  { %86 = vmatpush.msra.mxu0 %v67_v12  ;;  %167 = vmatpush.msra.mxu2 %v158_v35  ;;  %v152_v41 = vld [vmem:[#allocation5 + $0x160] sm:$0xff]  ;;  %v151_v42 = vld [vmem:[#allocation5 + $0x130] sm:$0xff]  ;;  %v200_v57 = vld [vmem:[#allocation5 + $0x258] sm:$0xff] }
  0x1e   :  { %129 = vmatpush.msra.mxu1 %v110_v17  ;;  %v150_v43 = vld [vmem:[#allocation5 + $0x100] sm:$0xff]  ;;  %v149_v44 = vld [vmem:[#allocation5 + $0xd0] sm:$0xff]  ;;  %209 = vmatpush.msra.mxu3 %v202_v55  ;;  %v199_v58 = vld [vmem:[#allocation5 + $0x228] sm:$0xff] }
  0x1f   :  { %87 = vmatpush.msra.mxu0 %v66_v14  ;;  %168 = vmatpush.msra.mxu2 %v157_v36  ;;  %v148_v45 = vld [vmem:[#allocation5 + $0xa0] sm:$0xff]  ;;  %v147_v51 = vld [vmem:[#allocation5 + $0x70] sm:$0xff]  ;;  %v198_v59 = vld [vmem:[#allocation5 + $0x1f8] sm:$0xff] }
  0x20   :  { %130 = vmatpush.msra.mxu1 %v109_v19  ;;  %v339_v46 = vld [vmem:[#allocation7] ss:$0 sm:$0xff]  ;;  %v145_v53 = vld [vmem:[#allocation5 + $0x10] sm:$0xff]  ;;  %210 = vmatpush.msra.mxu3 %v201_v56  ;;  %v197_v60 = vld [vmem:[#allocation5 + $0x1c8] sm:$0xff] }
  0x21   :  { %88 = vmatpush.msra.mxu0 %v65_v16  ;;  %169 = vmatpush.msra.mxu2 %v156_v37  ;;  %v146_v52 = vld [vmem:[#allocation5 + $0x40] sm:$0xff]  ;;  %v196_v61 = vld [vmem:[#allocation5 + $0x198] sm:$0xff]  ;;  %v195_v62 = vld [vmem:[#allocation5 + $0x168] sm:$0xff] }
  0x22   :  { %131 = vmatpush.msra.mxu1 %v108_v21  ;;  %211 = vmatpush.msra.mxu3 %v200_v57  ;;  %v194_v63 = vld [vmem:[#allocation5 + $0x138] sm:$0xff]  ;;  %v193_v0 = vld [vmem:[#allocation5 + $0x108] sm:$0xff]  ;;  %v340_v3 = vld [vmem:[#allocation7 + $0x1] ss:$0 sm:$0xff] }
  0x23   :  { %89 = vmatpush.msra.mxu0 %v64_v18  ;;  %170 = vmatpush.msra.mxu2 %v155_v38  ;;  %v192_v1 = vld [vmem:[#allocation5 + $0xd8] sm:$0xff]  ;;  %v191_v2 = vld [vmem:[#allocation5 + $0xa8] sm:$0xff]  ;;  %v246_v11 = vld [vmem:[#allocation5 + $0x2f0] sm:$0xff] }
  0x24   :  { %132 = vmatpush.msra.mxu1 %v107_v23  ;;  %212 = vmatpush.msra.mxu3 %v199_v58  ;;  %v190_v8 = vld [vmem:[#allocation5 + $0x78] sm:$0xff]  ;;  %v189_v9 = vld [vmem:[#allocation5 + $0x48] sm:$0xff]  ;;  %v245_v12 = vld [vmem:[#allocation5 + $0x2c0] sm:$0xff] }
  0x25   :  { %90 = vmatpush.msra.mxu0 %v63_v20  ;;  %171 = vmatpush.msra.mxu2 %v154_v39  ;;  %v188_v10 = vld [vmem:[#allocation5 + $0x18] sm:$0xff]  ;;  %v244_v13 = vld [vmem:[#allocation5 + $0x290] sm:$0xff]  ;;  %v243_v14 = vld [vmem:[#allocation5 + $0x260] sm:$0xff] }
  0x26   :  { %133 = vmatpush.msra.mxu1 %v106_v25  ;;  %213 = vmatpush.msra.mxu3 %v198_v59  ;;  %v242_v15 = vld [vmem:[#allocation5 + $0x230] sm:$0xff]  ;;  %v241_v16 = vld [vmem:[#allocation5 + $0x200] sm:$0xff]  ;;  %v288_v33 = vld [vmem:[#allocation5 + $0x2c8] sm:$0xff] }
  0x27   :  { %91 = vmatpush.msra.mxu0 %v62_v22  ;;  %172 = vmatpush.msra.mxu2 %v153_v40  ;;  %v240_v17 = vld [vmem:[#allocation5 + $0x1d0] sm:$0xff]  ;;  %v239_v18 = vld [vmem:[#allocation5 + $0x1a0] sm:$0xff]  ;;  %v287_v34 = vld [vmem:[#allocation5 + $0x298] sm:$0xff] }
  0x28   :  { %134 = vmatpush.msra.mxu1 %v105_v27  ;;  %214 = vmatpush.msra.mxu3 %v197_v60  ;;  %v238_v19 = vld [vmem:[#allocation5 + $0x170] sm:$0xff]  ;;  %v237_v20 = vld [vmem:[#allocation5 + $0x140] sm:$0xff]  ;;  %v286_v35 = vld [vmem:[#allocation5 + $0x268] sm:$0xff] }
  0x29   :  { %92 = vmatpush.msra.mxu0 %v61_v24  ;;  %173 = vmatpush.msra.mxu2 %v152_v41  ;;  %v236_v21 = vld [vmem:[#allocation5 + $0x110] sm:$0xff]  ;;  %v235_v22 = vld [vmem:[#allocation5 + $0xe0] sm:$0xff]  ;;  %v285_v36 = vld [vmem:[#allocation5 + $0x238] sm:$0xff] }
  0x2a   :  { %135 = vmatpush.msra.mxu1 %v104_v30  ;;  %215 = vmatpush.msra.mxu3 %v196_v61  ;;  %v234_v23 = vld [vmem:[#allocation5 + $0xb0] sm:$0xff]  ;;  %v341_v24 = vld [vmem:[#allocation7 + $0x2] ss:$0 sm:$0xff]  ;;  %v284_v37 = vld [vmem:[#allocation5 + $0x208] sm:$0xff] }
  0x2b   :  { %93 = vmatpush.msra.mxu0 %v60_v26  ;;  %174 = vmatpush.msra.mxu2 %v151_v42  ;;  %v232_v30 = vld [vmem:[#allocation5 + $0x50] sm:$0xff]  ;;  %v283_v38 = vld [vmem:[#allocation5 + $0x1d8] sm:$0xff]  ;;  %v282_v39 = vld [vmem:[#allocation5 + $0x1a8] sm:$0xff] }
  0x2c   :  { %136 = vmatpush.msra.mxu1 %v103_v31  ;;  %216 = vmatpush.msra.mxu3 %v195_v62  ;;  %v231_v31 = vld [vmem:[#allocation5 + $0x20] sm:$0xff]  ;;  %v281_v40 = vld [vmem:[#allocation5 + $0x178] sm:$0xff]  ;;  %v280_v41 = vld [vmem:[#allocation5 + $0x148] sm:$0xff] }
  0x2d   :  { %94 = vmatpush.msra.mxu0 %v59_v28  ;;  %175 = vmatpush.msra.mxu2 %v150_v43  ;;  %v279_v42 = vld [vmem:[#allocation5 + $0x118] sm:$0xff]  ;;  %v278_v43 = vld [vmem:[#allocation5 + $0xe8] sm:$0xff]  ;;  %v344_v58 = vld [vmem:[#allocation7 + $0x5] ss:$0 sm:$0xff] }
  0x2e   :  { %95 = vmatmul.f32.vlgmr.msra.gmra.mxu0 %v58_v29  ;;  %137 = vmatpush.msra.mxu1 %v102_v32  ;;  %v233_v29 = vld [vmem:[#allocation5 + $0x80] sm:$0xff]  ;;  %v289_v32 = vld [vmem:[#allocation5 + $0x2f8] sm:$0xff] }
  0x2f   :  { %176 = vmatpush.msra.mxu2 %v149_v44  ;;  %217 = vmatpush.msra.mxu3 %v194_v63  ;;  %v277_v44 = vld [vmem:[#allocation5 + $0xb8] sm:$0xff] }
  0x30   :  { %251 = vmatpush.msrb.mxu0 %v246_v11  ;;  %294 = vmatpush.msrb.mxu1 %v289_v32 }
  0x31   :  { %177 = vmatpush.msra.mxu2 %v148_v45  ;;  %218 = vmatpush.msra.mxu3 %v193_v0  ;;  %v342_v45 = vld [vmem:[#allocation7 + $0x3] ss:$0 sm:$0xff] }
  0x32   :  { %252 = vmatpush.msrb.mxu0 %v245_v12  ;;  %295 = vmatpush.msrb.mxu1 %v288_v33 }
  0x33   :  { %178 = vmatpush.msra.mxu2 %v147_v51  ;;  %219 = vmatpush.msra.mxu3 %v192_v1  ;;  %v275_v51 = vld [vmem:[#allocation5 + $0x58] sm:$0xff] }
  0x34   :  { %253 = vmatpush.msrb.mxu0 %v244_v13  ;;  %296 = vmatpush.msrb.mxu1 %v287_v34 }
  0x35   :  { %179 = vmatpush.msra.mxu2 %v146_v52  ;;  %220 = vmatpush.msra.mxu3 %v191_v2  ;;  %v274_v52 = vld [vmem:[#allocation5 + $0x28] sm:$0xff] }
  0x36   :  { %254 = vmatpush.msrb.mxu0 %v243_v14  ;;  %297 = vmatpush.msrb.mxu1 %v286_v35 }
  0x37   :  { %180 = vmatpush.msra.mxu2 %v145_v53  ;;  %221 = vmatpush.msra.mxu3 %v190_v8  ;;  %v343_v53 = vld [vmem:[#allocation7 + $0x4] ss:$0 sm:$0xff] }
  0x38   :  { %255 = vmatpush.msrb.mxu0 %v242_v15  ;;  %298 = vmatpush.msrb.mxu1 %v285_v36 }
  0x39   :  { %222 = vmatpush.msra.mxu3 %v189_v9 }
  0x3a   :  { %256 = vmatpush.msrb.mxu0 %v241_v16  ;;  %299 = vmatpush.msrb.mxu1 %v284_v37 }
  0x3b   :  { %223 = vmatpush.msra.mxu3 %v188_v10 }
  0x3c   :  { %257 = vmatpush.msrb.mxu0 %v240_v17  ;;  %300 = vmatpush.msrb.mxu1 %v283_v38 }
  0x3e   :  { %258 = vmatpush.msrb.mxu0 %v239_v18  ;;  %301 = vmatpush.msrb.mxu1 %v282_v39 }
  0x40   :  { %259 = vmatpush.msrb.mxu0 %v238_v19  ;;  %302 = vmatpush.msrb.mxu1 %v281_v40 }
  0x42   :  { %260 = vmatpush.msrb.mxu0 %v237_v20  ;;  %303 = vmatpush.msrb.mxu1 %v280_v41 }
  0x44   :  { %261 = vmatpush.msrb.mxu0 %v236_v21  ;;  %304 = vmatpush.msrb.mxu1 %v279_v42 }
  0x46   :  { %262 = vmatpush.msrb.mxu0 %v235_v22  ;;  %305 = vmatpush.msrb.mxu1 %v278_v43 }
  0x48   :  { %263 = vmatpush.msrb.mxu0 %v234_v23  ;;  %306 = vmatpush.msrb.mxu1 %v277_v44 }
  0x4a   :  { %264 = vmatpush.msrb.mxu0 %v233_v29 }
  0x4c   :  { %265 = vmatpush.msrb.mxu0 %v232_v30 }
  0x4e   :  { %266 = vmatpush.msrb.mxu0 %v231_v31 }
  0xab   :  { %v96_v47 = vpop.f32.mrf.mxu0 }
  0xac   :  { %v97_v48 = vadd.f32 %v339_v46, %v96_v47 }
  0xae   :  { %vm99_vm0 = vcmp.gt.f32.partialorder %v97_v48, 0.0  ;;  %v100_v49 = vmul.f32 0.01, %v97_v48 }
  0xb0   :  { %v101_v50 = vsel %vm99_vm0, %v97_v48, %v100_v49 }
  0xb1   :  { %138 = vmatmul.f32.vlgmr.msra.gmra.mxu1 %v101_v50  ;;  %v276_v50 = vld [vmem:[#allocation5 + $0x88] sm:$0xff] }
  0xb2   :  { %307 = vmatpush.msrb.mxu1 %v276_v50 }
  0xb4   :  { %308 = vmatpush.msrb.mxu1 %v275_v51 }
  0xb6   :  { %309 = vmatpush.msrb.mxu1 %v274_v52 }
 0x12e   :  { %v139_v4 = vpop.f32.mrf.mxu1 }
 0x12f   :  { %v140_v5 = vadd.f32 %v340_v3, %v139_v4 }
 0x131   :  { %vm142_vm1 = vcmp.gt.f32.partialorder %v140_v5, 0.0  ;;  %v143_v6 = vmul.f32 0.01, %v140_v5 }
 0x133   :  { %v144_v7 = vsel %vm142_vm1, %v140_v5, %v143_v6 }
 0x134   :  { %181 = vmatmul.f32.vlgmr.msra.gmra.mxu2 %v144_v7 }
 0x1b7   :  { %v182_v25 = vpop.f32.mrf.mxu2 }
 0x1b8   :  { %v183_v26 = vadd.f32 %v341_v24, %v182_v25 }
 0x1ba   :  { %vm185_vm2 = vcmp.gt.f32.partialorder %v183_v26, 0.0  ;;  %v186_v27 = vmul.f32 0.01, %v183_v26 }
 0x1bc   :  { %v187_v28 = vsel %vm185_vm2, %v183_v26, %v186_v27 }
 0x1bd   :  { %224 = vmatmul.f32.vlgmr.msra.gmra.mxu3 %v187_v28 }
 0x240   :  { %v225_v46 = vpop.f32.mrf.mxu3 }
 0x241   :  { %v226_v47 = vadd.f32 %v342_v45, %v225_v46 }
 0x243   :  { %v229_v48 = vmul.f32 0.01, %v226_v47  ;;  %vm228_vm3 = vcmp.gt.f32.partialorder %v226_v47, 0.0 }
 0x245   :  { %v230_v49 = vsel %vm228_vm3, %v226_v47, %v229_v48 }
 0x246   :  { %267 = vmatmul.f32.vlgmr.msrb.gmra.mxu0 %v230_v49 }
 0x2c3   :  { %v268_v54 = vpop.f32.mrf.mxu0 }
 0x2c4   :  { %v269_v55 = vadd.f32 %v343_v53, %v268_v54 }
 0x2c6   :  { %v272_v56 = vmul.f32 0.01, %v269_v55  ;;  %vm271_vm4 = vcmp.gt.f32.partialorder %v269_v55, 0.0 }
 0x2c8   :  { %v273_v57 = vsel %vm271_vm4, %v269_v55, %v272_v56 }
 0x2c9   :  { %310 = vmatmul.f32.vlgmr.msrb.gmra.mxu1 %v273_v57 }
 0x346   :  { %v311_v59 = vpop.f32.mrf.mxu1 }
 0x347   :  { %v312_v60 = vadd.f32 %v344_v58, %v311_v59 }
 0x349   :  { %314 = vst [vmem:[#allocation8] sm:$0xff] %v312_v60 }
 0x34a   :  { %325 = dma.vmem_to_hbm [thread:$0]  %s321_s2, 128, %s323_s30, [#allocation4]  }
 0x34b   :  { %445 = dma.done.wait [#allocation4], 128  }
 0x34c   :  { %446 = vsyncadd [#allocation4], 4294967168 }
 0x34d   :  { %330 = vsyncpa [#allocation3], 1 }
 0x34e   :  { %331 = vsyncpa [#allocation6], 1 }
 0x34f   :  { %332 = vsyncpa [#allocation4], 1 }

</bundles_post_ra>
